<compile_context>
chip_gen: v7x
topology: tpu7x:2x2x1
jax: 0.10.0
libtpu: 0.0.40
codegen_flags: <defaults>
</compile_context>

<pallas_src>
import jax
import jax.numpy as jnp
import numpy as np
from jax.experimental import pallas as pl
from jax.experimental.pallas import tpu as pltpu

HIDDEN = 50      # nn.Linear(2, 50)
HID_PAD = 64     # hidden padded to a sublane multiple -> unmasked loads / reduce
LANE = 128       # TPU lane width


def ode_func_kernel(scalars_ref, params_ref, y_ref, mask_ref, out_ref):
    """Fused ODEFunc forward (train mode):

        equation = cat([t.expand_as(y), y], dim=1)   # (N, 2)
        out1     = equation @ W1^T + b1              # (N, 50)
        dropped  = dropout_mask * out1
        result   = tanh(dropped) @ W2^T + b2         # (N, 1)
    """
    t = scalars_ref[0]            # scalar f32 from SMEM
    b2 = scalars_ref[1]

    w_t = params_ref[:, 0:1]      # (HID_PAD, 1)  W1 column multiplying t
    w_y = params_ref[:, 1:2]      # (HID_PAD, 1)  W1 column multiplying y
    b1 = params_ref[:, 2:3]       # (HID_PAD, 1)
    w2 = params_ref[:, 3:4]       # (HID_PAD, 1)

    y = y_ref[...]                # (1, TN) batch on lanes

    # Linear(2, 50) as broadcast-FMA (K = 2 is far too small for the MXU).
    out1 = w_t * t + w_y * y + b1                          # (HID_PAD, TN)

    # Dropout mask multiply (int8 0/1 expanded in-register) then Tanh (EUP).
    dropped = out1 * mask_ref[...].astype(jnp.float32)
    h = jnp.tanh(dropped)

    # Linear(50, 1) as a sublane reduction; padded hidden rows contribute 0.
    res = jnp.sum(h * w2, axis=0, keepdims=True) + b2      # (1, TN)
    out_ref[...] = res.astype(out_ref.dtype)


def ode_func_forward(t, y, w1, b1, dropout_mask, w2, b2):
    """One ODEFunc evaluation through a single pallas_call.

    All weights are packed into one VMEM-resident slab, (t, b2) live in SMEM,
    the batch is tiled along TPU lanes (parallel grid axis -> pipelined and
    split across v7x's two TensorCores), and the mask streams as int8.
    """
    # TODO(synk): for a full ODE solve, fuse many (t, y) evaluations / solver
    # steps into one pallas_call (extra "arbitrary" grid axis or in-kernel
    # fori_loop) so the parameter slab is DMA'd once for thousands of evals.
    y_flat = jnp.reshape(jnp.asarray(y, jnp.float32), (-1,))
    n = y_flat.shape[0]

    # Batch tile: 128 lanes for small batches, up to 512 lanes for large ones.
    tn = LANE * min(4, -(-n // LANE))
    n_pad = -(-n // tn) * tn
    num_tiles = n_pad // tn

    # SMEM scalars: [t, b2].
    scalars = jnp.stack([
        jnp.asarray(t, jnp.float32).reshape(()),
        jnp.asarray(b2, jnp.float32).reshape(()),
    ])

    # Packed parameter slab (HID_PAD, 4): [W1[:,0], W1[:,1], b1, W2].
    w1f = jnp.asarray(w1, jnp.float32).reshape(HIDDEN, 2)
    b1f = jnp.asarray(b1, jnp.float32).reshape(HIDDEN)
    w2f = jnp.asarray(w2, jnp.float32).reshape(HIDDEN)
    slab = jnp.stack([w1f[:, 0], w1f[:, 1], b1f, w2f], axis=1)       # (50, 4)
    slab = jnp.pad(slab, ((0, HID_PAD - HIDDEN), (0, 0)))            # (64, 4)

    # Batch-on-lanes activations.
    y_lanes = jnp.pad(y_flat, (0, n_pad - n)).reshape(1, n_pad)      # (1, n_pad)
    mask = jnp.asarray(dropout_mask).reshape(n, HIDDEN)
    mask_i8 = (mask != 0).astype(jnp.int8).T                         # (50, n)
    mask_i8 = jnp.pad(mask_i8, ((0, HID_PAD - HIDDEN), (0, n_pad - n)))

    out = pl.pallas_call(
        ode_func_kernel,
        out_shape=jax.ShapeDtypeStruct((1, n_pad), jnp.float32),
        grid=(num_tiles,),
        in_specs=[
            pl.BlockSpec(memory_space=pltpu.MemorySpace.SMEM),       # (t, b2)
            pl.BlockSpec((HID_PAD, 4), lambda i: (0, 0)),            # resident weights
            pl.BlockSpec((1, tn), lambda i: (0, i)),                 # y tile
            pl.BlockSpec((HID_PAD, tn), lambda i: (0, i)),           # mask tile
        ],
        out_specs=pl.BlockSpec((1, tn), lambda i: (0, i)),
        compiler_params=pltpu.CompilerParams(
            dimension_semantics=("parallel",)),
    )(scalars, slab, y_lanes, mask_i8)

    result = out[0, :n].reshape(n, 1)      # matches PyTorch result shape (N, 1)
    if n == 1:
        result = jnp.squeeze(result)       # result.squeeze() when y.size(0) == 1
    return result


def _reference(t, y, w1, b1, mask, w2, b2):
    """Pure-JAX reference mirroring the PyTorch forward (train mode)."""
    y2 = jnp.reshape(y, (y.shape[0], 1)).astype(jnp.float32)
    t2 = jnp.broadcast_to(jnp.reshape(t, (1, 1)), y2.shape)
    eq = jnp.concatenate([t2, y2], axis=1)                 # (N, 2)
    out1 = eq @ w1.T + b1                                  # (N, 50)
    dropped = mask * out1
    return jnp.tanh(dropped) @ w2.T + b2                   # (N, 1)


if __name__ == "__main__":
    N = 8  # batch of ODE states y

    key = jax.random.PRNGKey(0)
    k_y, k_w1, k_w2, k_b2, k_mask = jax.random.split(key, 5)

    # Inputs (scalar time t, state y).
    t_in = jnp.asarray(0.7, jnp.float32)
    y_in = jax.random.normal(k_y, (N,), dtype=jnp.float32)

    # Parameters, matching the module's __init__ style:
    #   net  = Linear(2, 50): weight ~ N(0, 0.1), bias = 0
    #   net2 = (Tanh, Linear(50, 1)): small deterministic values here
    w1 = 0.1 * jax.random.normal(k_w1, (HIDDEN, 2), dtype=jnp.float32)
    b1 = jnp.zeros((HIDDEN,), jnp.float32)
    w2 = (1.0 / np.sqrt(HIDDEN)) * jax.random.normal(k_w2, (1, HIDDEN), dtype=jnp.float32)
    b2 = (1.0 / np.sqrt(HIDDEN)) * jax.random.normal(k_b2, (1,), dtype=jnp.float32)

    # dropout_mask = bernoulli(0.5) of shape (N, 50), generated once and reused
    # (mirrors regenerate_dropout_mask; the module applies it with NO 1/(1-p) scale).
    dropout_mask = jax.random.bernoulli(k_mask, 0.5, (N, HIDDEN)).astype(jnp.float32)

    out = ode_func_forward(t_in, y_in, w1, b1, dropout_mask, w2, b2)
    out = jax.block_until_ready(out)

    ref = _reference(t_in, y_in, w1, b1, dropout_mask, w2, b2)
    np.testing.assert_allclose(np.asarray(out), np.asarray(ref), rtol=1e-5, atol=1e-5)

    print("KERNEL_OK")
</pallas_src>

<mosaic_0001>
module attributes {stable_mosaic.version = 11 : i64} {
  func.func @ode_func_kernel(%arg0: i32, %arg1: memref<2xf32, #tpu.memory_space<smem>>, %arg2: memref<64x4xf32, #tpu.memory_space<vmem>>, %arg3: memref<1x128xf32, #tpu.memory_space<vmem>>, %arg4: memref<64x128xi8, #tpu.memory_space<vmem>>, %arg5: memref<1x128xf32, #tpu.memory_space<vmem>>) attributes {dimension_semantics = [#tpu.dimension_semantics<parallel>], iteration_bounds = array<i64: 1>, scalar_prefetch = 0 : i64, scratch_operands = 0 : i64, tpu.core_type = #tpu.core_type<tc>, window_params = [{transform_indices = @transform_0, window_bounds = array<i64: 2>}, {pipeline_mode = #tpu.pipeline_mode<synchronous>, transform_indices = @transform_1, window_bounds = array<i64: 64, 4>}, {transform_indices = @transform_2, window_bounds = array<i64: 1, 128>}, {transform_indices = @transform_3, window_bounds = array<i64: 64, 128>}, {transform_indices = @transform_4, window_bounds = array<i64: 1, 128>}]} {
    %c0 = arith.constant 0 : index
    %0 = memref.load %arg1[%c0] : memref<2xf32, #tpu.memory_space<smem>>
    %c1 = arith.constant 1 : index
    %1 = memref.load %arg1[%c1] : memref<2xf32, #tpu.memory_space<smem>>
    %c0_0 = arith.constant 0 : index
    %c0_1 = arith.constant 0 : index
    %2 = vector.load %arg2[%c0_0, %c0_1] : memref<64x4xf32, #tpu.memory_space<vmem>>, vector<64x1xf32>
    %c0_2 = arith.constant 0 : index
    %c1_3 = arith.constant 1 : index
    %3 = vector.load %arg2[%c0_2, %c1_3] : memref<64x4xf32, #tpu.memory_space<vmem>>, vector<64x1xf32>
    %c0_4 = arith.constant 0 : index
    %c2 = arith.constant 2 : index
    %4 = vector.load %arg2[%c0_4, %c2] : memref<64x4xf32, #tpu.memory_space<vmem>>, vector<64x1xf32>
    %c0_5 = arith.constant 0 : index
    %c3 = arith.constant 3 : index
    %5 = vector.load %arg2[%c0_5, %c3] : memref<64x4xf32, #tpu.memory_space<vmem>>, vector<64x1xf32>
    %c0_6 = arith.constant 0 : index
    %c0_7 = arith.constant 0 : index
    %6 = vector.load %arg3[%c0_6, %c0_7] : memref<1x128xf32, #tpu.memory_space<vmem>>, vector<1x128xf32>
    %7 = vector.broadcast %0 : f32 to vector<64x1xf32>
    %8 = arith.mulf %2, %7 : vector<64x1xf32>
    %9 = vector.broadcast %3 : vector<64x1xf32> to vector<64x128xf32>
    %10 = vector.broadcast %6 : vector<1x128xf32> to vector<64x128xf32>
    %11 = arith.mulf %9, %10 : vector<64x128xf32>
    %12 = vector.broadcast %8 : vector<64x1xf32> to vector<64x128xf32>
    %13 = arith.addf %12, %11 : vector<64x128xf32>
    %14 = vector.broadcast %4 : vector<64x1xf32> to vector<64x128xf32>
    %15 = arith.addf %13, %14 : vector<64x128xf32>
    %c0_8 = arith.constant 0 : index
    %c0_9 = arith.constant 0 : index
    %16 = vector.load %arg4[%c0_8, %c0_9] : memref<64x128xi8, #tpu.memory_space<vmem>>, vector<64x128xi8>
    %17 = arith.sitofp %16 : vector<64x128xi8> to vector<64x128xf32>
    %18 = arith.mulf %15, %17 : vector<64x128xf32>
    %19 = math.tanh %18 : vector<64x128xf32>
    %20 = vector.broadcast %5 : vector<64x1xf32> to vector<64x128xf32>
    %21 = arith.mulf %19, %20 : vector<64x128xf32>
    %cst = arith.constant dense<0.000000e+00> : vector<128xf32>
    %22 = vector.multi_reduction <add>, %21, %cst [0] : vector<64x128xf32> to vector<128xf32>
    %23 = vector.shape_cast %22 : vector<128xf32> to vector<1x128xf32>
    %24 = vector.broadcast %1 : f32 to vector<1x128xf32>
    %25 = arith.addf %23, %24 : vector<1x128xf32>
    %c0_10 = arith.constant 0 : index
    %c0_11 = arith.constant 0 : index
    %26 = vector.load %arg5[%c0_10, %c0_11] : memref<1x128xf32, #tpu.memory_space<vmem>>, vector<1x128xf32>
    tpu.vector_store %arg5[%c0_10, %c0_11], %25 {strides = array<i32>} : memref<1x128xf32, #tpu.memory_space<vmem>>, vector<1x128xf32>,
    return
  }
  func.func @transform_0(%arg0: i32) -> i32 {
    %c0_i32 = arith.constant 0 : i32
    %c0_i32_0 = arith.constant 0 : i32
    return %c0_i32 : i32
  }
  func.func @transform_1(%arg0: i32) -> (i32, i32) {
    %c0_i32 = arith.constant 0 : i32
    %c0_i32_0 = arith.constant 0 : i32
    %c0_i32_1 = arith.constant 0 : i32
    return %c0_i32, %c0_i32_0 : i32, i32
  }
  func.func @transform_2(%arg0: i32) -> (i32, i32) {
    %c0_i32 = arith.constant 0 : i32
    %c0_i32_0 = arith.constant 0 : i32
    return %c0_i32, %arg0 : i32, i32
  }
  func.func @transform_3(%arg0: i32) -> (i32, i32) {
    %c0_i32 = arith.constant 0 : i32
    %c0_i32_0 = arith.constant 0 : i32
    return %c0_i32, %arg0 : i32, i32
  }
  func.func @transform_4(%arg0: i32) -> (i32, i32) {
    %c0_i32 = arith.constant 0 : i32
    %c0_i32_0 = arith.constant 0 : i32
    return %c0_i32, %arg0 : i32, i32
  }
}

</mosaic_0001>

<bundles_post_ra>
// kernel: tpu_custom_call.1
= control target key start
LH: loop header
LB: loop body
LE: loop exit
PB: predicated region body
PF: predicated region fallthrough
CT: control target
= control target key end

     0   :  { %9 = vsyncpa [#allocation4], 0  ;;  %s461_s0 = inlined_call_operand.vmem [shape: f32[2], index: 0, kind: input, shape index: {}]   ;;  %s462_s1 = inlined_call_operand.vmem [shape: f32[64,4], index: 1, kind: input, shape index: {}]   ;;  %s463_s2 = inlined_call_operand.vmem [shape: f32[1,128], index: 2, kind: input, shape index: {}]   ;;  %s464_s3 = inlined_call_operand.vmem [shape: s8[64,128], index: 3, kind: input, shape index: {}]   ;;  %s465_s4 = inlined_call_operand.hbm [shape: f32[1,128], index: 4, kind: output, shape index: {}]  }
   0x1   :  { %10 = vsyncpa [#allocation3], 0  ;;  %s17_s17 = sshll.u32 %s461_s0, 4  ;;  %s18_s17 = int_to_ptr.vmem [resolvable:$true] %s17_s17 }
   0x2   :  { %s338_s18 = scalar_lea.vmem %s18_s17, 16  ;;  %p343_p1 = scmp.lt.s32.totalorder %s18_s17, %s18_s17 }
   0x3   :  { %p339_p0 = scmp.ne.s32.totalorder %s18_s17, %s338_s18  ;;  %p344_p2 = scmp.lt.s32.totalorder %s338_s18, %s338_s18 }
   0x5   :  { %p345_p3 = por %p344_p2, %p343_p1 }
   0x7   :  { %p346_p4 = pnand %p345_p3, %p339_p0 }
   0x9   :  { %349 = shalt.err (!%p346_p4)
}
   0xa   :  { %s376_s19 = smov [#allocation2]  }
   0xb   :  { %20 = dma.vmem_to_smem %s18_s17, 16, %s376_s19, [#allocation4]  }
   0xc   :  { %372 = dma.done.wait [#allocation4], 16  }
   0xd   :  { %373 = vsyncadd [#allocation4], 4294967280 }
   0xe   :  { %30 = sfence }
   0xf   :  { %v413_v0 = vld [vmem:[%s462_s1 + $0x10] sm:$0xff]  ;;  %s31_s22 = sld [smem:[#allocation2]]  ;;  %v377_v1 = vmov 1   ;;  %v378_v2 = vmov 0   ;;  %v36_v3 = vld [vmem:[%s462_s1 + $0x18] sm:$0xff]  ;;  %v33_v4 = vld [vmem:[%s462_s1] sm:$0xff] }
  0x10   :  { %306 = vset.pattern.permute.xlu1 %v377_v1  ;;  %307 = vset.pattern.permute.xlu0 %v378_v2  ;;  %v34_v5 = vld [vmem:[%s462_s1 + $0x8] sm:$0xff]  ;;  %v37_v10 = vld [vmem:[%s462_s1 + $0x20] sm:$0xff]  ;;  %v379_v13 = vmov 2   ;;  %v39_v14 = vld [vmem:[%s462_s1 + $0x30] sm:$0xff]  ;;  %v380_v18 = vmov 3   ;;  %s381_s14 = smov [#allocation5]  }
  0x11   :  { %63 = vperm.xlu1 %306, %v413_v0   ;;  %v40_v15 = vld [vmem:[%s462_s1 + $0x38] sm:$0xff]  ;;  %v38_v16 = vld [vmem:[%s462_s1 + $0x28] sm:$0xff]  ;;  %v299_v37 = vld [vmem:[%s463_s2] ss:$0 sm:$0xff]  ;;  %s289_s15 = sshll.u32 %s381_s14, 4  ;;  %s290_s15 = int_to_ptr.vmem [resolvable:$true] %s289_s15 }
  0x12   :  { %v193_v41 = vld [vmem:[%s464_s3] sm:$0xff]  ;;  %v194_v55 = vld [vmem:[%s464_s3 + $0x8] sm:$0xff]  ;;  %s298_s3 = sld [smem:[#allocation2 + $0x1]]  ;;  %s350_s16 = scalar_lea.vmem %s290_s15, 16 }
  0x13   :  { %v195_v42 = vunpack.c.0.s8 %v193_v41  ;;  %v196_v43 = vunpack.c.1.s8 %v193_v41  ;;  %v197_v48 = vunpack.c.2.s8 %v193_v41  ;;  %v198_v54 = vunpack.c.3.s8 %v193_v41  ;;  %p351_p5 = scmp.ne.s32.totalorder %s290_s15, %s350_s16  ;;  %s354_s17 = scalar_lea.vmem %s290_s15, 32 }
  0x14   :  { %v199_v61 = vunpack.c.0.s8 %v194_v55  ;;  %p355_p6 = scmp.lt.s32.totalorder %s290_s15, %s290_s15  ;;  %p356_p7 = scmp.lt.s32.totalorder %s354_s17, %s350_s16 }
  0x15   :  { %68 = vperm.xlu1 %306, %v36_v3   ;;  %v42_v6 = vstv %s31_s22  ;;  %v203_v50 = vcvt.s32.f32 %v195_v42  ;;  %v204_v57 = vcvt.s32.f32 %v196_v43  ;;  %v205_v59 = vcvt.s32.f32 %v197_v48 }
  0x16   :  { %v43_v7 = vmul.f32 %v42_v6, %v33_v4  ;;  %v44_v8 = vmul.f32 %v42_v6, %v34_v5  ;;  %v46_v9 = vmul.f32 %v42_v6, %v36_v3  ;;  %v45_v11 = vmul.f32 %v42_v6, %v413_v0  ;;  %p357_p8 = por %p356_p7, %p355_p6 }
  0x17   :  { %v47_v12 = vmul.f32 %v42_v6, %v37_v10  ;;  %v48_v17 = vmul.f32 %v42_v6, %v38_v16  ;;  %v49_v19 = vmul.f32 %v42_v6, %v39_v14  ;;  %v50_v20 = vmul.f32 %v42_v6, %v40_v15 }
  0x18   :  { %107 = vperm.xlu0 %307, %v43_v7   ;;  %p358_p9 = pnand %p357_p8, %p351_p5 }
  0x19   :  { %308 = vset.pattern.permute.xlu1 %v378_v2 }
  0x1a   :  { %112 = vperm.xlu1 %308, %v44_v8   ;;  %v201_v8 = vunpack.c.2.s8 %v194_v55 }
  0x1c   :  { %122 = vperm.xlu0 %307, %v46_v9  }
  0x1e   :  { %117 = vperm.xlu1 %308, %v45_v11   ;;  %v207_v11 = vcvt.s32.f32 %v199_v61 }
  0x20   :  { %127 = vperm.xlu0 %307, %v47_v12  }
  0x22   :  { %309 = vset.pattern.permute.xlu1 %v379_v13 }
  0x23   :  { %158 = vperm.xlu1 %309, %v34_v5  }
  0x24   :  { %313 = vset.pattern.permute.xlu0 %v377_v1 }
  0x25   :  { %53 = vperm.xlu0 %313, %v33_v4  }
  0x27   :  { %310 = vset.pattern.permute.xlu1 %v377_v1 }
  0x28   :  { %73 = vperm.xlu1 %310, %v37_v10  }
  0x29   :  { %58 = vperm.xlu0 %313, %v34_v5  }
  0x2c   :  { %311 = vset.pattern.permute.xlu1 %v379_v13 }
  0x2d   :  { %162 = vperm.xlu1 %311, %v413_v0   ;;  %83 = vperm.xlu0 %313, %v39_v14  }
  0x31   :  { %312 = vset.pattern.permute.xlu1 %v377_v1  ;;  %88 = vperm.xlu0 %313, %v40_v15   ;;  %v200_v1 = vunpack.c.1.s8 %v194_v55 }
  0x32   :  { %78 = vperm.xlu1 %312, %v38_v16  }
  0x35   :  { %317 = vset.pattern.permute.xlu0 %v379_v13 }
  0x36   :  { %314 = vset.pattern.permute.xlu1 %v379_v13  ;;  %154 = vperm.xlu0 %317, %v33_v4  }
  0x37   :  { %166 = vperm.xlu1 %314, %v36_v3  }
  0x3a   :  { %174 = vperm.xlu0 %317, %v38_v16  }
  0x3b   :  { %315 = vset.pattern.permute.xlu1 %v378_v2 }
  0x3c   :  { %132 = vperm.xlu1 %315, %v48_v17   ;;  %v202_v17 = vunpack.c.3.s8 %v194_v55 }
  0x3e   :  { %182 = vperm.xlu0 %317, %v40_v15  }
  0x40   :  { %316 = vset.pattern.permute.xlu1 %v379_v13 }
  0x41   :  { %170 = vperm.xlu1 %316, %v37_v10  }
  0x42   :  { %321 = vset.pattern.permute.xlu0 %v380_v18 }
  0x43   :  { %232 = vperm.xlu0 %321, %v34_v5  }
  0x45   :  { %318 = vset.pattern.permute.xlu1 %v378_v2 }
  0x46   :  { %137 = vperm.xlu1 %318, %v49_v19  }
  0x47   :  { %244 = vperm.xlu0 %321, %v37_v10  }
  0x4a   :  { %142 = vperm.xlu1 %318, %v50_v20   ;;  %v209_v20 = vcvt.s32.f32 %v201_v8 }
  0x4b   :  { %252 = vperm.xlu0 %321, %v39_v14  }
  0x4e   :  { %319 = vset.pattern.permute.xlu1 %v379_v13 }
  0x4f   :  { %178 = vperm.xlu1 %319, %v39_v14   ;;  %v208_v14 = vcvt.s32.f32 %v200_v1 }
  0x53   :  { %320 = vset.pattern.permute.xlu1 %v380_v18 }
  0x54   :  { %228 = vperm.xlu1 %320, %v33_v4  }
  0x58   :  { %236 = vperm.xlu1 %320, %v413_v0  }
  0x5c   :  { %240 = vperm.xlu1 %320, %v36_v3   ;;  %v206_v3 = vcvt.s32.f32 %v198_v54 }
  0x60   :  { %248 = vperm.xlu1 %320, %v38_v16  }
  0x64   :  { %256 = vperm.xlu1 %320, %v40_v15  }
  0x90   :  { %v64_v21 = vpop.permute.xlu1 %63 }
  0x91   :  { %v99_v47 = vmul.f32 %v299_v37, %v64_v21 }
  0x94   :  { %v69_v22 = vpop.permute.xlu1 %68 }
  0x95   :  { %v100_v56 = vmul.f32 %v299_v37, %v69_v22 }
  0x97   :  { %v108_v23 = vpop.permute.xlu0 %107 }
  0x99   :  { %v113_v24 = vpop.permute.xlu1 %112 }
  0x9b   :  { %v123_v25 = vpop.permute.xlu0 %122 }
  0x9c   :  { %v148_v63 = vadd.f32 %v123_v25, %v100_v56 }
  0x9d   :  { %v118_v26 = vpop.permute.xlu1 %117 }
  0x9e   :  { %v147_v51 = vadd.f32 %v118_v26, %v99_v47 }
  0x9f   :  { %v128_v27 = vpop.permute.xlu0 %127 }
  0xa2   :  { %v159_v28 = vpop.permute.xlu1 %158 }
  0xa4   :  { %v54_v30 = vpop.permute.xlu0 %53 }
  0xa5   :  { %v97_v40 = vmul.f32 %v299_v37, %v54_v30 }
  0xa7   :  { %v74_v29 = vpop.permute.xlu1 %73  ;;  %v145_v49 = vadd.f32 %v108_v23, %v97_v40 }
  0xa8   :  { %v59_v32 = vpop.permute.xlu0 %58  ;;  %v101_v52 = vmul.f32 %v299_v37, %v74_v29 }
  0xa9   :  { %v98_v39 = vmul.f32 %v299_v37, %v59_v32 }
  0xaa   :  { %v149_v4 = vadd.f32 %v128_v27, %v101_v52 }
  0xab   :  { %v146_v44 = vadd.f32 %v113_v24, %v98_v39 }
  0xac   :  { %v163_v31 = vpop.permute.xlu1 %162  ;;  %v84_v34 = vpop.permute.xlu0 %83 }
  0xad   :  { %v186_v58 = vadd.f32 %v159_v28, %v146_v44  ;;  %v187_v60 = vadd.f32 %v163_v31, %v147_v51  ;;  %v103_v15 = vmul.f32 %v299_v37, %v84_v34  ;;  %v210_v28 = vcvt.s32.f32 %v202_v17 }
  0xaf   :  { %v212_v5 = vmul.f32 %v204_v57, %v186_v58  ;;  %v213_v9 = vmul.f32 %v205_v59, %v187_v60 }
  0xb0   :  { %v89_v36 = vpop.permute.xlu0 %88 }
  0xb1   :  { %v79_v33 = vpop.permute.xlu1 %78  ;;  %v104_v16 = vmul.f32 %v299_v37, %v89_v36 }
  0xb2   :  { %v102_v0 = vmul.f32 %v299_v37, %v79_v33 }
  0xb5   :  { %v155_v45 = vpop.permute.xlu0 %154 }
  0xb6   :  { %v167_v35 = vpop.permute.xlu1 %166  ;;  %v185_v53 = vadd.f32 %v155_v45, %v145_v49 }
  0xb7   :  { %v188_v6 = vadd.f32 %v167_v35, %v148_v63 }
  0xb8   :  { %v211_v2 = vmul.f32 %v203_v50, %v185_v53 }
  0xb9   :  { %v175_v10 = vpop.permute.xlu0 %174  ;;  %v214_v18 = vmul.f32 %v206_v3, %v188_v6 }
  0xba   :  { %322 = vtanh.f32 %v211_v2 }
  0xbb   :  { %v133_v38 = vpop.permute.xlu1 %132  ;;  %324 = vtanh.f32 %v212_v5 }
  0xbc   :  { %v150_v7 = vadd.f32 %v133_v38, %v102_v0  ;;  %326 = vtanh.f32 %v213_v9 }
  0xbd   :  { %v183_v25 = vpop.permute.xlu0 %182  ;;  %328 = vtanh.f32 %v214_v18 }
  0xbe   :  { %v190_v19 = vadd.f32 %v175_v10, %v150_v7 }
  0xc0   :  { %v171_v46 = vpop.permute.xlu1 %170  ;;  %v216_v27 = vmul.f32 %v208_v14, %v190_v19 }
  0xc1   :  { %v189_v12 = vadd.f32 %v171_v46, %v149_v4  ;;  %v280_v4 = vstv %s298_s3 }
  0xc2   :  { %v233_v33 = vpop.permute.xlu0 %232 }
  0xc3   :  { %v215_v21 = vmul.f32 %v207_v11, %v189_v12 }
  0xc4   :  { %v323_v32 = vpop.eup %322 }
  0xc5   :  { %v138_v62 = vpop.permute.xlu1 %137  ;;  %330 = vtanh.f32 %v215_v21  ;;  %v325_v35 = vpop.eup %324 }
  0xc6   :  { %v151_v22 = vadd.f32 %v138_v62, %v103_v15  ;;  %332 = vtanh.f32 %v216_v27  ;;  %v327_v37 = vpop.eup %326  ;;  %v260_v39 = vmul.f32 %v325_v35, %v233_v33  ;;  %v245_v44 = vpop.permute.xlu0 %244 }
  0xc7   :  { %v329_v41 = vpop.eup %328 }
  0xc9   :  { %v143_v13 = vpop.permute.xlu1 %142 }
  0xca   :  { %v152_v23 = vadd.f32 %v143_v13, %v104_v16  ;;  %v253_v55 = vpop.permute.xlu0 %252 }
  0xcc   :  { %v192_v29 = vadd.f32 %v183_v25, %v152_v23 }
  0xce   :  { %v179_v24 = vpop.permute.xlu1 %178  ;;  %v218_v34 = vmul.f32 %v210_v28, %v192_v29 }
  0xcf   :  { %v191_v26 = vadd.f32 %v179_v24, %v151_v22  ;;  %v331_v43 = vpop.eup %330 }
  0xd0   :  { %v333_v48 = vpop.eup %332  ;;  %v263_v49 = vmul.f32 %v331_v43, %v245_v44 }
  0xd1   :  { %v217_v30 = vmul.f32 %v209_v20, %v191_v26 }
  0xd3   :  { %v229_v31 = vpop.permute.xlu1 %228  ;;  %334 = vtanh.f32 %v217_v30 }
  0xd4   :  { %v259_v36 = vmul.f32 %v323_v32, %v229_v31  ;;  %336 = vtanh.f32 %v218_v34 }
  0xd6   :  { %v267_v42 = vadd.f32 %v260_v39, %v259_v36 }
  0xd7   :  { %v237_v38 = vpop.permute.xlu1 %236 }
  0xd8   :  { %v261_v40 = vmul.f32 %v327_v37, %v237_v38 }
  0xda   :  { %v268_v46 = vadd.f32 %v267_v42, %v261_v40 }
  0xdb   :  { %v241_v45 = vpop.permute.xlu1 %240 }
  0xdc   :  { %v262_v47 = vmul.f32 %v329_v41, %v241_v45 }
  0xdd   :  { %v335_v51 = vpop.eup %334 }
  0xde   :  { %v269_v50 = vadd.f32 %v268_v46, %v262_v47  ;;  %v265_v56 = vmul.f32 %v335_v51, %v253_v55  ;;  %v337_v58 = vpop.eup %336 }
  0xdf   :  { %v249_v52 = vpop.permute.xlu1 %248 }
  0xe0   :  { %v264_v53 = vmul.f32 %v333_v48, %v249_v52  ;;  %v270_v54 = vadd.f32 %v269_v50, %v263_v49 }
  0xe2   :  { %v271_v57 = vadd.f32 %v270_v54, %v264_v53 }
  0xe3   :  { %v257_v59 = vpop.permute.xlu1 %256 }
  0xe4   :  { %v266_v60 = vmul.f32 %v337_v58, %v257_v59  ;;  %v272_v61 = vadd.f32 %v271_v57, %v265_v56 }
  0xe6   :  { %v273_v62 = vadd.f32 %v272_v61, %v266_v60 }
  0xe8   :  { %v274_v63 = vrot.slane %v273_v62, 4 }
  0xea   :  { %v275_v0 = vadd.f32 %v274_v63, %v273_v62 }
  0xec   :  { %v276_v1 = vrot.slane %v275_v0, 2 }
  0xee   :  { %v277_v2 = vadd.f32 %v276_v1, %v275_v0 }
  0xf0   :  { %v278_v3 = vrot.slane %v277_v2, 1 }
  0xf2   :  { %v279_v5 = vadd.f32 %v278_v3, %v277_v2 }
  0xf4   :  { %v281_v6 = vadd.f32 %v280_v4, %v279_v5 }
  0xf6   :  { %282 = vst [vmem:[#allocation5] sm:$0x1] %v281_v6 }
  0xf7   :  { %361 = shalt.err (!%p358_p9)
}
  0xf8   :  { %s362_s20 = scalar_lea.hbm %s465_s4, 16 }
  0xf9   :  { %p363_p10 = scmp.ne.s32.totalorder %s465_s4, %s362_s20  ;;  %p366_p11 = scmp.lt.u32.totalorder %s362_s20, %s465_s4 }
  0xfb   :  { %p368_p12 = pnand %p366_p11, %p363_p10 }
  0xfd   :  { %371 = shalt.err (!%p368_p12)
}
  0xfe   :  { %292 = dma.vmem_to_hbm [thread:$0]  %s290_s15, 16, %s465_s4, [#allocation3]  }
  0xff   :  { %374 = dma.done.wait [#allocation3], 16  }
 0x100   :  { %375 = vsyncadd [#allocation3], 4294967280 }
 0x101   :  { %296 = vsyncpa [#allocation3], 1 }
 0x102   :  { %297 = vsyncpa [#allocation4], 1 }

</bundles_post_ra>
